<compile_context>
chip_gen: v5e
topology: v5e:2x2
jax: 0.10.0
libtpu: 0.0.40
codegen_flags: <defaults>
</compile_context>

<pallas_src>
import functools
import numpy as np
import jax
import jax.numpy as jnp
from jax.experimental import pallas as pl
from jax.experimental.pallas import tpu as pltpu

CHANNELS = 32
KVOL = 27            # 3x3x3 submanifold kernel volume
BN_EPS = 1e-4
HEAD_OUT = 8         # packed head output width: sem logits [0:2], offsets [2:5]

_OFFSETS = [(dx, dy, dz) for dx in (-1, 0, 1) for dy in (-1, 0, 1) for dz in (-1, 0, 1)]


# ----------------------------- Pallas kernels -----------------------------

def _conv_kernel(*refs, residual, act, emit_raw, m_valid, tile):
    """Fused submanifold-conv row tile.

    y   = im2col_tile @ W  [+ residual]                      (f32 accumulation)
    raw = y  (bf16, optional; consumed later as a residual)
    act = relu(y * scale + shift), rows >= m_valid zeroed    (next conv's gather input)
    """
    it = iter(refs)
    g_ref = next(it)                         # (tile, K)  bf16 im2col operand
    w_ref = next(it)                         # (K, Cout)  bf16, VMEM-resident
    res_ref = next(it) if residual else None  # (tile, Cout) bf16
    s_ref = next(it) if act else None        # (1, Cout) f32
    t_ref = next(it) if act else None        # (1, Cout) f32
    raw_ref = next(it) if emit_raw else None  # (tile, Cout) bf16
    act_ref = next(it) if act else None      # (tile, Cout) bf16 / f32

    y = jnp.dot(g_ref[...], w_ref[...], preferred_element_type=jnp.float32)
    if residual:
        y = y + res_ref[...].astype(jnp.float32)
    if emit_raw:
        raw_ref[...] = y.astype(raw_ref.dtype)
    if act:
        a = jnp.maximum(y * s_ref[...] + t_ref[...], 0.0)
        # Zero padding rows (incl. the pad row used for missing neighbors) so the
        # result stays correct for arbitrary BN running stats (nonzero shift).
        row = pl.program_id(0) * tile + jax.lax.broadcasted_iota(jnp.int32, a.shape, 0)
        a = jnp.where(row < m_valid, a, 0.0)
        act_ref[...] = a.astype(act_ref.dtype)


def _head_kernel(x_ref, w1_ref, b1_ref, w2_ref, b2_ref, o_ref):
    """Both MLP heads fused: relu(x @ W1c + b1c) @ W2c + b2c, 8-lane packed output."""
    x = x_ref[...].astype(jnp.bfloat16)
    h = jnp.dot(x, w1_ref[...], preferred_element_type=jnp.float32) + b1_ref[...]
    h = jnp.maximum(h, 0.0)
    y = jnp.dot(h.astype(jnp.bfloat16), w2_ref[...],
                preferred_element_type=jnp.float32) + b2_ref[...]
    o_ref[...] = y.astype(o_ref.dtype)


# ----------------------------- Pallas wrappers -----------------------------

def _row_tile(nrows):
    """Largest sublane-aligned row tile that still yields >= 2 grid tiles (megacore)."""
    for t in (1024, 512, 256, 128, 64, 32, 16, 8):
        if nrows >= 2 * t:
            return t
    return 8


def fused_subm_conv(g, w_flat, *, m_valid, tile, residual=None, act_bn=None,
                    emit_raw=False, act_dtype=jnp.bfloat16):
    """g: (M_pad, K) bf16 im2col tensor.  w_flat: (K, Cout) bf16.
    residual: optional (M_pad, Cout) bf16 added before any activation.
    act_bn: (scale, shift), each (1, Cout) f32 -> emit relu(y*scale+shift) (row-masked).
    Returns (raw_or_None, act)."""
    assert act_bn is not None
    m_pad, kdim = g.shape
    cout = w_flat.shape[1]

    args = [g, w_flat]
    in_specs = [pl.BlockSpec((tile, kdim), lambda i: (i, 0)),
                pl.BlockSpec((kdim, cout), lambda i: (0, 0))]
    if residual is not None:
        args.append(residual)
        in_specs.append(pl.BlockSpec((tile, cout), lambda i: (i, 0)))
    args += [act_bn[0], act_bn[1]]
    in_specs += [pl.BlockSpec((1, cout), lambda i: (0, 0)),
                 pl.BlockSpec((1, cout), lambda i: (0, 0))]

    out_shapes, out_specs = [], []
    if emit_raw:
        out_shapes.append(jax.ShapeDtypeStruct((m_pad, cout), jnp.bfloat16))
        out_specs.append(pl.BlockSpec((tile, cout), lambda i: (i, 0)))
    out_shapes.append(jax.ShapeDtypeStruct((m_pad, cout), act_dtype))
    out_specs.append(pl.BlockSpec((tile, cout), lambda i: (i, 0)))

    kernel = functools.partial(_conv_kernel, residual=residual is not None, act=True,
                               emit_raw=emit_raw, m_valid=m_valid, tile=tile)
    single = len(out_shapes) == 1
    out = pl.pallas_call(
        kernel,
        out_shape=out_shapes[0] if single else tuple(out_shapes),
        grid_spec=pltpu.PrefetchScalarGridSpec(
            num_scalar_prefetch=0,
            grid=(m_pad // tile,),
            in_specs=in_specs,
            out_specs=out_specs[0] if single else tuple(out_specs)),
        compiler_params=pltpu.CompilerParams(dimension_semantics=("parallel",)),
    )(*args)
    if emit_raw:
        raw, act = out
        return raw, act
    return None, out


def fused_heads(x_pad, w1c, b1c, w2c, b2c, *, tile):
    """x_pad: (N_pad, C) f32 -> (N_pad, HEAD_OUT) f32 (both heads packed on 8 lanes)."""
    n_pad, cin = x_pad.shape
    mid = w1c.shape[1]
    outw = w2c.shape[1]
    return pl.pallas_call(
        _head_kernel,
        out_shape=jax.ShapeDtypeStruct((n_pad, outw), jnp.float32),
        grid_spec=pltpu.PrefetchScalarGridSpec(
            num_scalar_prefetch=0,
            grid=(n_pad // tile,),
            in_specs=[pl.BlockSpec((tile, cin), lambda i: (i, 0)),
                      pl.BlockSpec((cin, mid), lambda i: (0, 0)),
                      pl.BlockSpec((1, mid), lambda i: (0, 0)),
                      pl.BlockSpec((mid, outw), lambda i: (0, 0)),
                      pl.BlockSpec((1, outw), lambda i: (0, 0))],
            out_specs=pl.BlockSpec((tile, outw), lambda i: (i, 0))),
        compiler_params=pltpu.CompilerParams(dimension_semantics=("parallel",)),
    )(x_pad, w1c, b1c, w2c, b2c)


# ----------------------------- host-side glue -----------------------------

def voxelize_np(coords, feats, batch_ids, batch_size, voxel_size,
                use_coords, use_feats, epsilon=1.0):
    """Numpy port of voxelize(): per-batch voxel grid, nanmean feature pooling."""
    pts = np.hstack([coords, feats]).astype(np.float64)
    vcs, vfs, v2ps = [], [], []
    total = 0
    for i in range(batch_size):
        p = pts[batch_ids == i]
        if p.shape[0] == 0:
            continue
        mn = p[:, :3].min(axis=0)
        vidx = np.floor((p[:, :3] - mn) / voxel_size).astype(np.int64)  # (n, 3) x,y,z
        uniq, inv = np.unique(vidx, axis=0, return_inverse=True)
        inv = inv.reshape(-1)
        m = uniq.shape[0]
        accum = np.zeros((m, p.shape[1]), dtype=np.float64)
        cnt = np.zeros((m, 1), dtype=np.float64)
        np.add.at(accum, inv, p)
        np.add.at(cnt, inv, 1.0)
        vf = accum / cnt  # == torch.nanmean over zero-padded voxel slots
        if not use_coords:
            vf[:, :3] = 1.0
        if not use_feats:
            vf[:, 3:] = 1.0
        vf = np.hstack([vf[:, 3:], vf[:, :3]])                       # [feat | x y z]
        vc = np.hstack([np.full((m, 1), i, dtype=np.int64), uniq])   # [batch, x, y, z]
        vfs.append(vf)
        vcs.append(vc)
        v2ps.append(inv + total)
        total += m
    voxel_feats = np.concatenate(vfs, 0).astype(np.float32)
    voxel_coords = np.concatenate(vcs, 0).astype(np.int32)
    v2p_map = np.concatenate(v2ps, 0).astype(np.int32)
    spatial_shape = voxel_coords.max(axis=0) + 1
    return voxel_feats, voxel_coords, v2p_map, spatial_shape[1:]


def build_neighbor_map(voxel_coords, m_pad, pad_index):
    """Vectorized: for each active voxel, the index of the active voxel at coord+offset,
    else pad_index (int64 keys + searchsorted instead of a Python dict loop)."""
    m = voxel_coords.shape[0]
    vc = voxel_coords.astype(np.int64)
    b = vc[:, 0]
    x = vc[:, 1] + 1
    y = vc[:, 2] + 1
    z = vc[:, 3] + 1
    sx = int(x.max()) + 2
    sy = int(y.max()) + 2
    sz = int(z.max()) + 2

    def key(bb, xx, yy, zz):
        return ((bb * sx + xx) * sy + yy) * sz + zz

    keys = key(b, x, y, z)
    order = np.argsort(keys)
    skeys = keys[order]

    nbr = np.full((m_pad, KVOL), pad_index, dtype=np.int32)
    for col, (dx, dy, dz) in enumerate(_OFFSETS):
        q = key(b, x + dx, y + dy, z + dz)
        pos = np.searchsorted(skeys, q)
        pos_c = np.minimum(pos, m - 1)
        hit = skeys[pos_c] == q
        nbr[:m, col] = np.where(hit, order[pos_c], pad_index)
    return nbr


# ----------------------------- parameters -----------------------------

def init_params(key, channels=CHANNELS, dim_in=4):
    keys = iter(jax.random.split(key, 32))

    def w(shape, scale=0.1):
        return (jax.random.normal(next(keys), shape) * scale).astype(jnp.float32)

    def bn(c):
        # eval-mode BatchNorm1d: weight=1, bias=0, running_mean=0, running_var=1
        scale = jnp.full((1, c), 1.0 / np.sqrt(1.0 + BN_EPS), dtype=jnp.float32)
        shift = jnp.zeros((1, c), dtype=jnp.float32)
        return {"scale": scale, "shift": shift}

    return {
        "input_conv_w": w((KVOL, dim_in, channels)),
        "res_blocks": [
            {"bn1": bn(channels), "conv1_w": w((KVOL, channels, channels)),
             "bn2": bn(channels), "conv2_w": w((KVOL, channels, channels))}
            for _ in range(2)
        ],
        "out_bn": bn(channels),
        "semantic": {"w1": w((channels, channels)),
                     "b1": jnp.zeros((1, channels), jnp.float32),
                     "bn": bn(channels),
                     "w2": w((channels, 2)),
                     "b2": jnp.zeros((1, 2), jnp.float32)},
        "offset": {"w1": w((channels, channels)),
                   "b1": jnp.zeros((1, channels), jnp.float32),
                   "bn": bn(channels),
                   "w2": w((channels, 3)),
                   "b2": jnp.zeros((1, 3), jnp.float32)},
    }


# ----------------------------- forward -----------------------------

def treelearn_forward(params, coords, feats, batch_ids, batch_size,
                      voxel_size=0.1, use_coords=False, use_feats=True):
    # forward_backbone: voxelize (host)
    voxel_feats, voxel_coords, v2p_map, _ = voxelize_np(
        coords, feats, batch_ids, batch_size, voxel_size, use_coords, use_feats)
    m = voxel_feats.shape[0]
    tile_m = _row_tile(m + 1)
    m_pad = ((m + 1 + tile_m - 1) // tile_m) * tile_m       # >= m+1, multiple of tile
    feats_pad = np.zeros((m_pad, voxel_feats.shape[1]), np.float32)
    feats_pad[:m] = voxel_feats
    nbr = jnp.asarray(build_neighbor_map(voxel_coords, m_pad, pad_index=m))

    def wflat(w3):  # (27, Cin, Cout) -> (27*Cin, Cout), bf16 for the MXU
        k, cin, cout = w3.shape
        return w3.reshape(k * cin, cout).astype(jnp.bfloat16)

    def gather(src_bf16):
        # im2col gather, channels-last / row-major. TODO(synk): see header — stays an
        # XLA gather (HBM round trip of the 27x tensor); no in-kernel equivalent lowers.
        return jnp.take(src_bf16, nbr, axis=0).reshape(m_pad, -1)

    conv = functools.partial(fused_subm_conv, m_valid=m, tile=tile_m)
    blk1, blk2 = params["res_blocks"]
    bn = lambda d: (d["scale"], d["shift"])

    # input_conv: SubMConv3d(4 -> 32, k=3, bias=False).  Emits the raw output (residual
    # for block 1) and relu(bn1_blk1 * out) (block-1 conv1's gather input).
    g0 = gather(jnp.asarray(feats_pad).astype(jnp.bfloat16))          # (M_pad, 108)
    x0_raw, a0 = conv(g0, wflat(params["input_conv_w"]),
                      emit_raw=True, act_bn=bn(blk1["bn1"]))

    # UBlock top level, block 1: y1 = conv2(relu(bn2(conv1(relu(bn1(x0)))))) + x0
    _, ah = conv(gather(a0), wflat(blk1["conv1_w"]), act_bn=bn(blk1["bn2"]))
    x1_raw, a1 = conv(gather(ah), wflat(blk1["conv2_w"]), residual=x0_raw,
                      emit_raw=True, act_bn=bn(blk2["bn1"]))

    # block 2, with output_layer BN+ReLU fused into the last conv (f32, row-masked).
    _, ah = conv(gather(a1), wflat(blk2["conv1_w"]), act_bn=bn(blk2["bn2"]))
    _, x_final = conv(gather(ah), wflat(blk2["conv2_w"]), residual=x1_raw,
                      act_bn=bn(params["out_bn"]), act_dtype=jnp.float32)

    # forward_head: one padded per-point gather feeds both backbone_feats and the heads.
    n = coords.shape[0]
    tile_n = _row_tile(n)
    n_pad = ((n + tile_n - 1) // tile_n) * tile_n
    v2p_pad = np.zeros((n_pad,), np.int32)
    v2p_pad[:n] = v2p_map
    bf_pad = jnp.take(x_final, jnp.asarray(v2p_pad), axis=0)          # (N_pad, 32) f32
    backbone_feats = bf_pad[:n]

    sem, off = params["semantic"], params["offset"]

    def fold_bn_into_linear1(p):
        # eval-mode BN after Linear1 is affine: fold scale/shift into W1/b1.
        s, t = p["bn"]["scale"], p["bn"]["shift"]
        return p["w1"] * s, p["b1"] * s + t

    w1s, b1s = fold_bn_into_linear1(sem)
    w1o, b1o = fold_bn_into_linear1(off)
    w1c = jnp.concatenate([w1s, w1o], axis=1).astype(jnp.bfloat16)    # (32, 64)
    b1c = jnp.concatenate([b1s, b1o], axis=1)                         # (1, 64) f32
    c = CHANNELS
    w2c = jnp.zeros((2 * c, HEAD_OUT), jnp.float32)
    w2c = w2c.at[:c, 0:2].set(sem["w2"]).at[c:, 2:5].set(off["w2"]).astype(jnp.bfloat16)
    b2c = jnp.zeros((1, HEAD_OUT), jnp.float32)
    b2c = b2c.at[:, 0:2].set(sem["b2"]).at[:, 2:5].set(off["b2"])

    head_out = fused_heads(bf_pad, w1c, b1c, w2c, b2c, tile=tile_n)   # (N_pad, 8) f32
    return {"backbone_feats": backbone_feats,
            "semantic_prediction_logits": head_out[:n, 0:2],
            "offset_predictions": head_out[:n, 2:5]}


# ----------------------------- main -----------------------------

if __name__ == "__main__":
    key = jax.random.PRNGKey(0)
    k_c, k_f, k_p = jax.random.split(key, 3)

    batch_size = 2
    n_per_batch = 128
    n_points = batch_size * n_per_batch

    coords = np.asarray(jax.random.uniform(k_c, (n_points, 3)) * 1.5, dtype=np.float32)
    feats = np.asarray(jax.random.normal(k_f, (n_points, 1)), dtype=np.float32)
    batch_ids = np.repeat(np.arange(batch_size), n_per_batch).astype(np.int32)

    params = init_params(k_p)
    out = treelearn_forward(params, coords, feats, batch_ids, batch_size)
    out = jax.tree_util.tree_map(jax.block_until_ready, out)

    assert out["backbone_feats"].shape == (n_points, CHANNELS)
    assert out["semantic_prediction_logits"].shape == (n_points, 2)
    assert out["offset_predictions"].shape == (n_points, 3)
    assert not bool(jnp.isnan(out["semantic_prediction_logits"]).any())
    assert not bool(jnp.isnan(out["offset_predictions"]).any())

    print("KERNEL_OK")
</pallas_src>

<mosaic_0001>
module attributes {stable_mosaic.version = 11 : i64} {
  func.func @_conv_kernel(%arg0: i32, %arg1: memref<64x108xbf16, #tpu.memory_space<vmem>>, %arg2: memref<108x32xbf16, #tpu.memory_space<vmem>>, %arg3: memref<1x32xf32, #tpu.memory_space<vmem>>, %arg4: memref<1x32xf32, #tpu.memory_space<vmem>>, %arg5: memref<64x32xbf16, #tpu.memory_space<vmem>>, %arg6: memref<64x32xbf16, #tpu.memory_space<vmem>>) attributes {dimension_semantics = [#tpu.dimension_semantics<parallel>], iteration_bounds = array<i64: 4>, scalar_prefetch = 0 : i64, scratch_operands = 0 : i64, tpu.core_type = #tpu.core_type<tc>, window_params = [{transform_indices = @transform_0, window_bounds = array<i64: 64, 108>}, {pipeline_mode = #tpu.pipeline_mode<synchronous>, transform_indices = @transform_1, window_bounds = array<i64: 108, 32>}, {pipeline_mode = #tpu.pipeline_mode<synchronous>, transform_indices = @transform_2, window_bounds = array<i64: 1, 32>}, {pipeline_mode = #tpu.pipeline_mode<synchronous>, transform_indices = @transform_3, window_bounds = array<i64: 1, 32>}, {transform_indices = @transform_4, window_bounds = array<i64: 64, 32>}, {transform_indices = @transform_5, window_bounds = array<i64: 64, 32>}]} {
    %c0 = arith.constant 0 : index
    %c0_0 = arith.constant 0 : index
    %0 = vector.load %arg1[%c0, %c0_0] : memref<64x108xbf16, #tpu.memory_space<vmem>>, vector<64x108xbf16>
    %c0_1 = arith.constant 0 : index
    %c0_2 = arith.constant 0 : index
    %1 = vector.load %arg2[%c0_1, %c0_2] : memref<108x32xbf16, #tpu.memory_space<vmem>>, vector<108x32xbf16>
    %cst = arith.constant dense<0.000000e+00> : vector<64x32xf32>
    %2 = tpu.matmul %0, %1, %cst {dimension_numbers = #tpu.dot_dimension_numbers<[1], [0], [0], [1], [0, 0, 1, 1], [], []>} : vector<64x108xbf16>, vector<108x32xbf16>, vector<64x32xf32> -> vector<64x32xf32>
    %3 = arith.truncf %2 : vector<64x32xf32> to vector<64x32xbf16>
    %c0_3 = arith.constant 0 : index
    %c0_4 = arith.constant 0 : index
    %4 = vector.load %arg5[%c0_3, %c0_4] : memref<64x32xbf16, #tpu.memory_space<vmem>>, vector<64x32xbf16>
    tpu.vector_store %arg5[%c0_3, %c0_4], %3 {strides = array<i32>} : memref<64x32xbf16, #tpu.memory_space<vmem>>, vector<64x32xbf16>,
    %c0_5 = arith.constant 0 : index
    %c0_6 = arith.constant 0 : index
    %5 = vector.load %arg3[%c0_5, %c0_6] : memref<1x32xf32, #tpu.memory_space<vmem>>, vector<1x32xf32>
    %6 = vector.broadcast %5 : vector<1x32xf32> to vector<64x32xf32>
    %7 = arith.mulf %2, %6 : vector<64x32xf32>
    %c0_7 = arith.constant 0 : index
    %c0_8 = arith.constant 0 : index
    %8 = vector.load %arg4[%c0_7, %c0_8] : memref<1x32xf32, #tpu.memory_space<vmem>>, vector<1x32xf32>
    %9 = vector.broadcast %8 : vector<1x32xf32> to vector<64x32xf32>
    %10 = arith.addf %7, %9 : vector<64x32xf32>
    %cst_9 = arith.constant 0.000000e+00 : f32
    %11 = vector.broadcast %cst_9 : f32 to vector<64x32xf32>
    %12 = arith.maximumf %10, %11 : vector<64x32xf32>
    %c64_i32 = arith.constant 64 : i32
    %13 = arith.muli %arg0, %c64_i32 : i32
    %14 = tpu.iota {dimensions = array<i32: 0>} : vector<64x32xi32>
    %15 = vector.broadcast %13 : i32 to vector<64x32xi32>
    %16 = arith.addi %15, %14 : vector<64x32xi32>
    %c253_i32 = arith.constant 253 : i32
    %17 = vector.broadcast %c253_i32 : i32 to vector<64x32xi32>
    %18 = arith.cmpi slt, %16, %17 : vector<64x32xi32>
    %cst_10 = arith.constant 0.000000e+00 : f32
    %19 = vector.broadcast %cst_10 : f32 to vector<64x32xf32>
    %20 = arith.select %18, %12, %19 : vector<64x32xi1>, vector<64x32xf32>
    %21 = arith.truncf %20 : vector<64x32xf32> to vector<64x32xbf16>
    %c0_11 = arith.constant 0 : index
    %c0_12 = arith.constant 0 : index
    %22 = vector.load %arg6[%c0_11, %c0_12] : memref<64x32xbf16, #tpu.memory_space<vmem>>, vector<64x32xbf16>
    tpu.vector_store %arg6[%c0_11, %c0_12], %21 {strides = array<i32>} : memref<64x32xbf16, #tpu.memory_space<vmem>>, vector<64x32xbf16>,
    return
  }
  func.func @transform_0(%arg0: i32) -> (i32, i32) {
    %c0_i32 = arith.constant 0 : i32
    %c0_i32_0 = arith.constant 0 : i32
    return %arg0, %c0_i32 : i32, i32
  }
  func.func @transform_1(%arg0: i32) -> (i32, i32) {
    %c0_i32 = arith.constant 0 : i32
    %c0_i32_0 = arith.constant 0 : i32
    %c0_i32_1 = arith.constant 0 : i32
    return %c0_i32, %c0_i32_0 : i32, i32
  }
  func.func @transform_2(%arg0: i32) -> (i32, i32) {
    %c0_i32 = arith.constant 0 : i32
    %c0_i32_0 = arith.constant 0 : i32
    %c0_i32_1 = arith.constant 0 : i32
    return %c0_i32, %c0_i32_0 : i32, i32
  }
  func.func @transform_3(%arg0: i32) -> (i32, i32) {
    %c0_i32 = arith.constant 0 : i32
    %c0_i32_0 = arith.constant 0 : i32
    %c0_i32_1 = arith.constant 0 : i32
    return %c0_i32, %c0_i32_0 : i32, i32
  }
  func.func @transform_4(%arg0: i32) -> (i32, i32) {
    %c0_i32 = arith.constant 0 : i32
    %c0_i32_0 = arith.constant 0 : i32
    return %arg0, %c0_i32 : i32, i32
  }
  func.func @transform_5(%arg0: i32) -> (i32, i32) {
    %c0_i32 = arith.constant 0 : i32
    %c0_i32_0 = arith.constant 0 : i32
    return %arg0, %c0_i32 : i32, i32
  }
}

</mosaic_0001>

<bundles_post_ra>
// kernel: tpu_custom_call.1
= control target key start
LH: loop header
LB: loop body
LE: loop exit
PB: predicated region body
PF: predicated region fallthrough
CT: control target
= control target key end

     0   :  { %s704_s18 = smov 0   ;;  %s831_s0 = inlined_call_operand.vmem [shape: bf16[256,108], index: 0, kind: input, shape index: {}]   ;;  %s832_s1 = inlined_call_operand.vmem [shape: bf16[108,32], index: 1, kind: input, shape index: {}]   ;;  %s833_s2 = inlined_call_operand.vmem [shape: f32[1,32], index: 2, kind: input, shape index: {}]   ;;  %s834_s3 = inlined_call_operand.vmem [shape: f32[1,32], index: 3, kind: input, shape index: {}]   ;;  %s835_s4 = inlined_call_operand.vmem [shape: bf16[256,32], index: 4, kind: output, shape index: {0}]   ;;  %s836_s5 = inlined_call_operand.vmem [shape: bf16[256,32], index: 5, kind: output, shape index: {1}]  }
   0x1 LB: > { %s562_s19 = sadd.s32 4294967295, %s672_s18   ;;  %p566_p0 = scmp.ge.s32.totalorder %s672_s18, 1  ;;  %s672_s18 = sphi %s704_s18, %s16_s18  }
   0x2   : > { %p191_p1 = scmp.lt.s32.totalorder %s672_s18, 5 }
   0x4   : > { %p192_p2 = pnand %p566_p0, %p191_p1 }
   0x5   : > { %s567_s28 = sshll.u32 (!%p192_p2), %s562_s19, 3  ;;  %s621_s16 = sshll.u32 (!%p192_p2), %s562_s19, 6 }
   0x6   : > { %195 = sbr.rel (%p192_p2) target bundleno = 195 (0xc3), region = 36  ;;  %p225_p3 = scmp.lt.s32.totalorder (!%p192_p2), %s567_s28, 31 }
   0xb   : > { %v615_v0 = vld [vmem:[%s832_s1 + $0x30] sm:$0xf]  ;;  %v634_v1 = vld [vmem:[%s832_s1 + $0x30] sm:$0x30]  ;;  %vm339_vm0 = vcmask 1045504   ;;  %v633_v4 = vld [vmem:[%s832_s1 + $0x28] sm:$0xff]  ;;  %v422_v14 = vlaneseq  ;;  %v751_v18 = vstv %s621_s16 }
   0xc   : > { %v616_v2 = vor.u32 %v634_v1, %v615_v0  ;;  %v632_v5 = vld [vmem:[%s832_s1 + $0x20] sm:$0xff]  ;;  %v631_v6 = vld [vmem:[%s832_s1 + $0x18] sm:$0xff]  ;;  %v630_v7 = vld [vmem:[%s832_s1 + $0x10] sm:$0xff]  ;;  %s838_s28 = smov (!%p225_p3, %s567_s28), 31  ;;  %vm326_vm1 = vcmask 883712   ;;  %vm380_vm2 = vcmask 257024  }
   0xd   : > { %v629_v8 = vld [vmem:[%s832_s1 + $0x8] sm:$0xff]  ;;  %s735_s10 = sshll.u32 %s838_s28, 2  ;;  %v628_v9 = vld [vmem:[%s832_s1] sm:$0xff]  ;;  %v423_v15 = vshrl.u32 %v422_v14, 7 }
   0xe   : > { %v341_v3 = vsel %vm339_vm0, %v616_v2, 0  ;;  %s228_s15 = scalar_lea.vmem %s831_s0, %s735_s10  ;;  %v749_v17 = vld [vmem:[%s833_s2] ss:$0 sm:$0xff]  ;;  %s762_s25 = scalar_lea.vmem %s835_s4, %s735_s10 }
   0xf   : > { %344 = vmatpush.bf16.msra.mxu0 %v341_v3  ;;  %635 = vmatpush.bf16.msra.mxu1 %v341_v3  ;;  %v624_v10 = vld [vmem:[%s228_s15] sm:$0xff]  ;;  %v625_v11 = vld [vmem:[%s228_s15 + $0x8] sm:$0xff]  ;;  %v626_v12 = vld [vmem:[%s228_s15 + $0x10] sm:$0xff]  ;;  %v425_v16 = vadd.s32 16, %v423_v15  ;;  %v427_v20 = vadd.s32 32, %v423_v15  ;;  %v432_v22 = vadd.s32 %v751_v18, %v423_v15  ;;  %v429_v29 = vadd.s32 48, %v423_v15  ;;  %s780_s27 = scalar_lea.vmem %s836_s5, %s735_s10 }
  0x10   : > { %636 = vmatpush.bf16.msra.mxu2 %v341_v3  ;;  %637 = vmatpush.bf16.msra.mxu3 %v341_v3  ;;  %v627_v13 = vld [vmem:[%s228_s15 + $0x18] sm:$0xff]  ;;  %v756_v19 = vld [vmem:[%s834_s3] ss:$0 sm:$0xff]  ;;  %v424_v33 = vadd.s32 8, %v423_v15  ;;  %v426_v36 = vadd.s32 24, %v423_v15  ;;  %v428_v59 = vadd.s32 40, %v423_v15 }
  0x11   : > { %v434_v24 = vadd.s32 %v751_v18, %v425_v16  ;;  %v436_v32 = vadd.s32 %v751_v18, %v427_v20  ;;  %vm440_vm3 = vcmp.lt.s32.totalorder %v432_v22, 253  ;;  %v438_v37 = vadd.s32 %v751_v18, %v429_v29 }
  0x12   : > { %v433_v42 = vadd.s32 %v751_v18, %v424_v33  ;;  %v435_v52 = vadd.s32 %v751_v18, %v426_v36  ;;  %v430_v62 = vadd.s32 56, %v423_v15 }
  0x13   : > { %345 = vmatpush.bf16.msra.mxu0 %v633_v4  ;;  %638 = vmatpush.bf16.msra.mxu1 %v633_v4  ;;  %vm442_vm4 = vcmp.lt.s32.totalorder %v434_v24, 253  ;;  %vm444_vm5 = vcmp.lt.s32.totalorder %v436_v32, 253  ;;  %vm446_vm6 = vcmp.lt.s32.totalorder %v438_v37, 253 }
  0x14   : > { %639 = vmatpush.bf16.msra.mxu2 %v633_v4  ;;  %640 = vmatpush.bf16.msra.mxu3 %v633_v4  ;;  %vm441_vm7 = vcmp.lt.s32.totalorder %v433_v42, 253  ;;  %vm443_vm8 = vcmp.lt.s32.totalorder %v435_v52, 253 }
  0x17   : > { %346 = vmatpush.bf16.msra.mxu0 %v632_v5  ;;  %641 = vmatpush.bf16.msra.mxu1 %v632_v5 }
  0x18   : > { %642 = vmatpush.bf16.msra.mxu2 %v632_v5  ;;  %643 = vmatpush.bf16.msra.mxu3 %v632_v5 }
  0x1b   : > { %347 = vmatpush.bf16.msra.mxu0 %v631_v6  ;;  %644 = vmatpush.bf16.msra.mxu1 %v631_v6 }
  0x1c   : > { %645 = vmatpush.bf16.msra.mxu2 %v631_v6  ;;  %646 = vmatpush.bf16.msra.mxu3 %v631_v6 }
  0x1f   : > { %348 = vmatpush.bf16.msra.mxu0 %v630_v7  ;;  %647 = vmatpush.bf16.msra.mxu1 %v630_v7 }
  0x20   : > { %648 = vmatpush.bf16.msra.mxu2 %v630_v7  ;;  %649 = vmatpush.bf16.msra.mxu3 %v630_v7  ;;  %v437_v7 = vadd.s32 %v751_v18, %v428_v59 }
  0x22   : > { %vm445_vm9 = vcmp.lt.s32.totalorder %v437_v7, 253 }
  0x23   : > { %349 = vmatpush.bf16.msra.mxu0 %v629_v8  ;;  %650 = vmatpush.bf16.msra.mxu1 %v629_v8 }
  0x24   : > { %651 = vmatpush.bf16.msra.mxu2 %v629_v8  ;;  %652 = vmatpush.bf16.msra.mxu3 %v629_v8 }
  0x27   : > { %350 = vmatpush.bf16.msra.mxu0 %v628_v9  ;;  %653 = vmatpush.bf16.msra.mxu1 %v628_v9 }
  0x28   : > { %654 = vmatpush.bf16.msra.mxu2 %v628_v9  ;;  %655 = vmatpush.bf16.msra.mxu3 %v628_v9 }
  0x2a   : > { %617 = vmatmul.msk.bf16.vlgmr.msra.gmra.mxu0 %vm326_vm1, %v624_v10  ;;  %618 = vmatmul.msk.bf16.vlgmr.msra.gmra.mxu1 %vm326_vm1, %v625_v11 }
  0x2b   : > { %619 = vmatmul.msk.bf16.vlgmr.msra.gmra.mxu2 %vm326_vm1, %v626_v12  ;;  %620 = vmatmul.msk.bf16.vlgmr.msra.gmra.mxu3 %vm326_vm1, %v627_v13  ;;  %v439_v12 = vadd.s32 %v751_v18, %v430_v62 }
  0x2d   : > { %vm447_vm10 = vcmp.lt.s32.totalorder %v439_v12, 253 }
  0xa7   : > { %v352_v21 = vpop.f32.mrf.mxu0  ;;  %v357_v23 = vpop.f32.mrf.mxu1 }
  0xa8   : > { %v372_v25 = vpack.c.bf16 %v352_v21, %v352_v21  ;;  %v393_v26 = vmul.f32 %v749_v17, %v352_v21  ;;  %v374_v27 = vpack.c.bf16 %v357_v23, %v357_v23  ;;  %v395_v28 = vmul.f32 %v749_v17, %v357_v23 }
  0xaa   : > { %381 = vst.msk [vmem:[%s762_s25] sm:$0xf] %vm380_vm2, %v372_v25  ;;  %v405_v30 = vadd.f32 %v756_v19, %v393_v26  ;;  %v407_v31 = vadd.f32 %v756_v19, %v395_v28 }
  0xab   : > { %383 = vst.msk [vmem:[%s762_s25 + $0x8] sm:$0xf] %vm380_vm2, %v374_v27 }
  0xac   : > { %v413_v34 = vmax.f32 %v405_v30, 0.0  ;;  %v415_v35 = vmax.f32 %v407_v31, 0.0 }
  0xae   : > { %v448_v38 = vsel %vm440_vm3, %v413_v34, 0.0  ;;  %v450_v39 = vsel %vm442_vm4, %v415_v35, 0.0  ;;  %v362_v40 = vpop.f32.mrf.mxu2  ;;  %v367_v41 = vpop.f32.mrf.mxu3 }
  0xaf   : > { %v456_v43 = vpack.c.bf16 %v448_v38, %v448_v38  ;;  %v458_v44 = vpack.c.bf16 %v450_v39, %v450_v39  ;;  %v376_v45 = vpack.c.bf16 %v362_v40, %v362_v40  ;;  %v397_v46 = vmul.f32 %v749_v17, %v362_v40  ;;  %v354_v47 = vpop.f32.mrf.mxu0  ;;  %v359_v48 = vpop.f32.mrf.mxu1 }
  0xb0   : > { %v378_v49 = vpack.c.bf16 %v367_v41, %v367_v41  ;;  %v399_v50 = vmul.f32 %v749_v17, %v367_v41  ;;  %v394_v51 = vmul.f32 %v749_v17, %v354_v47  ;;  %v373_v54 = vpack.c.bf16 %v354_v47, %v354_v47 }
  0xb1   : > { %464 = vst.msk [vmem:[%s780_s27] sm:$0xf] %vm380_vm2, %v456_v43  ;;  %v409_v53 = vadd.f32 %v756_v19, %v397_v46  ;;  %v396_v55 = vmul.f32 %v749_v17, %v359_v48  ;;  %v375_v58 = vpack.c.bf16 %v359_v48, %v359_v48 }
  0xb2   : > { %466 = vst.msk [vmem:[%s780_s27 + $0x8] sm:$0xf] %vm380_vm2, %v458_v44  ;;  %v411_v56 = vadd.f32 %v756_v19, %v399_v50  ;;  %v406_v57 = vadd.f32 %v756_v19, %v394_v51 }
  0xb3   : > { %385 = vst.msk [vmem:[%s762_s25 + $0x10] sm:$0xf] %vm380_vm2, %v376_v45  ;;  %v417_v60 = vmax.f32 %v409_v53, 0.0  ;;  %v408_v61 = vadd.f32 %v756_v19, %v396_v55 }
  0xb4   : > { %387 = vst.msk [vmem:[%s762_s25 + $0x18] sm:$0xf] %vm380_vm2, %v378_v49  ;;  %v419_v63 = vmax.f32 %v411_v56, 0.0  ;;  %v414_v0 = vmax.f32 %v406_v57, 0.0 }
  0xb5   : > { %v452_v1 = vsel %vm444_vm5, %v417_v60, 0.0  ;;  %382 = vst.msk [vmem:[%s762_s25 + $0x4] sm:$0xf] %vm380_vm2, %v373_v54  ;;  %v416_v2 = vmax.f32 %v408_v61, 0.0 }
  0xb6   : > { %v460_v3 = vpack.c.bf16 %v452_v1, %v452_v1  ;;  %v454_v4 = vsel %vm446_vm6, %v419_v63, 0.0  ;;  %v449_v5 = vsel %vm441_vm7, %v414_v0, 0.0  ;;  %384 = vst.msk [vmem:[%s762_s25 + $0xc] sm:$0xf] %vm380_vm2, %v375_v58  ;;  %v364_v6 = vpop.f32.mrf.mxu2  ;;  %v369_v8 = vpop.f32.mrf.mxu3 }
  0xb7   : > { %v462_v9 = vpack.c.bf16 %v454_v4, %v454_v4  ;;  %v457_v10 = vpack.c.bf16 %v449_v5, %v449_v5  ;;  %v451_v11 = vsel %vm443_vm8, %v416_v2, 0.0  ;;  %v377_v14 = vpack.c.bf16 %v364_v6, %v364_v6 }
  0xb8   : > { %468 = vst.msk [vmem:[%s780_s27 + $0x10] sm:$0xf] %vm380_vm2, %v460_v3  ;;  %v459_v13 = vpack.c.bf16 %v451_v11, %v451_v11  ;;  %v398_v15 = vmul.f32 %v749_v17, %v364_v6  ;;  %v400_v16 = vmul.f32 %v749_v17, %v369_v8  ;;  %v379_v20 = vpack.c.bf16 %v369_v8, %v369_v8 }
  0xb9   : > { %470 = vst.msk [vmem:[%s780_s27 + $0x18] sm:$0xf] %vm380_vm2, %v462_v9 }
  0xba   : > { %465 = vst.msk [vmem:[%s780_s27 + $0x4] sm:$0xf] %vm380_vm2, %v457_v10  ;;  %v410_v21 = vadd.f32 %v756_v19, %v398_v15  ;;  %v412_v18 = vadd.f32 %v756_v19, %v400_v16 }
  0xbb   : > { %467 = vst.msk [vmem:[%s780_s27 + $0xc] sm:$0xf] %vm380_vm2, %v459_v13 }
  0xbc   : > { %386 = vst.msk [vmem:[%s762_s25 + $0x14] sm:$0xf] %vm380_vm2, %v377_v14  ;;  %v418_v22 = vmax.f32 %v410_v21, 0.0  ;;  %v420_v23 = vmax.f32 %v412_v18, 0.0 }
  0xbd   : > { %388 = vst.msk [vmem:[%s762_s25 + $0x1c] sm:$0xf] %vm380_vm2, %v379_v20 }
  0xbe   : > { %v453_v17 = vsel %vm445_vm9, %v418_v22, 0.0  ;;  %v455_v24 = vsel %vm447_vm10, %v420_v23, 0.0 }
  0xbf   : > { %v461_v25 = vpack.c.bf16 %v453_v17, %v453_v17  ;;  %v463_v26 = vpack.c.bf16 %v455_v24, %v455_v24 }
  0xc1   : > { %469 = vst.msk [vmem:[%s780_s27 + $0x14] sm:$0xf] %vm380_vm2, %v461_v25 }
  0xc2   : > { %471 = vst.msk [vmem:[%s780_s27 + $0x1c] sm:$0xf] %vm380_vm2, %v463_v26 }
  0xc3 PF: > { %s16_s18 = sadd.s32 1, %s672_s18  }
  0xc4   : > { %p13_p4 = scmp.ge.s32.totalorder %s16_s18, 6  }
  0xc6   :  { %15 = sbr.rel (!%p13_p4) target bundleno = 1 (0x1), region = 78 }

</bundles_post_ra>
